<compile_context>
chip_gen: v6e
topology: v6e:2x2x1
jax: 0.10.0
libtpu: 0.0.40
codegen_flags: <defaults>
</compile_context>

<pallas_src>
import math
import functools
import numpy as np

import jax
import jax.numpy as jnp
from jax.experimental import pallas as pl
from jax.experimental.pallas import tpu as pltpu

_LANE = 128


def _round_up(x, m):
    return ((x + m - 1) // m) * m


def _pick_vmem_limit():
    try:
        info = pltpu.get_tpu_info()
        cap = getattr(info, "vmem_capacity_bytes", None)
        if cap:
            return int(min(96 * 1024 * 1024, (int(cap) * 3) // 4))
    except Exception:
        pass
    return 64 * 1024 * 1024


_VMEM_LIMIT = _pick_vmem_limit()


# ----------------------------------------------------------------------------
# Tiled matmul (+bias / +residual / +GELU epilogue)
# ----------------------------------------------------------------------------

def _mm_kernel(*refs, has_bias, has_res, apply_gelu):
    a_ref, w_ref = refs[0], refs[1]
    idx = 2
    b_ref = r_ref = None
    if has_bias:
        b_ref = refs[idx]; idx += 1
    if has_res:
        r_ref = refs[idx]; idx += 1
    o_ref, acc_ref = refs[idx], refs[idx + 1]

    kk = pl.program_id(2)

    @pl.when(kk == 0)
    def _():
        acc_ref[...] = jnp.zeros_like(acc_ref)

    acc_ref[...] += jnp.dot(a_ref[...], w_ref[...],
                            preferred_element_type=jnp.float32)

    @pl.when(kk == pl.num_programs(2) - 1)
    def _():
        acc = acc_ref[...]
        if has_bias:
            acc = acc + b_ref[...]
        if has_res:
            acc = acc + r_ref[...]
        if apply_gelu:
            # PyTorch nn.GELU default is the exact (erf) form; epilogue in f32.
            acc = jax.nn.gelu(acc, approximate=False)
        o_ref[...] = acc.astype(o_ref.dtype)


def prep_matmul_weight(w_kn):
    """Pad a (K, N) weight to lane-dense multiples of 128 and cast to bf16."""
    K, N = w_kn.shape
    Kp, Np = _round_up(K, _LANE), _round_up(N, _LANE)
    return jnp.pad(w_kn.astype(jnp.bfloat16), ((0, Kp - K), (0, Np - N)))


def prep_bias(b):
    N = b.shape[0]
    Np = _round_up(N, _LANE)
    return jnp.pad(b.astype(jnp.float32), (0, Np - N)).reshape(1, Np)


def matmul_bias(a, w_p, n_valid, b_p=None, residual=None, apply_gelu=False,
                out_dtype=jnp.float32):
    """(M,K) @ pre-padded bf16 (Kp,Np) weight; returns (M, n_valid) in out_dtype."""
    M, K = a.shape
    Kp, Np = w_p.shape

    if M >= 256:
        tm = 256
    elif M >= 128:
        tm = 128
    else:
        tm = _round_up(M, 8)
    Mp = _round_up(M, tm)
    tn = 256 if Np % 256 == 0 else 128
    tk = 512
    while Kp % tk:
        tk //= 2
    grid = (Mp // tm, Np // tn, Kp // tk)

    a_bf = a.astype(jnp.bfloat16)
    a_p = a_bf if (Mp == M and Kp == K) else jnp.pad(a_bf, ((0, Mp - M), (0, Kp - K)))

    in_specs = [pl.BlockSpec((tm, tk), lambda i, j, kk: (i, kk)),
                pl.BlockSpec((tk, tn), lambda i, j, kk: (kk, j))]
    operands = [a_p, w_p]
    has_bias = b_p is not None
    if has_bias:
        in_specs.append(pl.BlockSpec((1, tn), lambda i, j, kk: (0, j)))
        operands.append(b_p)
    has_res = residual is not None
    if has_res:
        r_f = residual.astype(jnp.float32)
        if r_f.shape != (Mp, Np):
            r_f = jnp.pad(r_f, ((0, Mp - r_f.shape[0]), (0, Np - r_f.shape[1])))
        in_specs.append(pl.BlockSpec((tm, tn), lambda i, j, kk: (i, j)))
        operands.append(r_f)

    kern = functools.partial(_mm_kernel, has_bias=has_bias, has_res=has_res,
                             apply_gelu=apply_gelu)
    out = pl.pallas_call(
        kern,
        out_shape=jax.ShapeDtypeStruct((Mp, Np), out_dtype),
        grid=grid,
        in_specs=in_specs,
        out_specs=pl.BlockSpec((tm, tn), lambda i, j, kk: (i, j)),
        scratch_shapes=[pltpu.VMEM((tm, tn), jnp.float32)],
        compiler_params=pltpu.CompilerParams(
            dimension_semantics=("parallel", "parallel", "arbitrary"),
            vmem_limit_bytes=_VMEM_LIMIT),
    )(*operands)
    return out[:M, :n_valid]


# ----------------------------------------------------------------------------
# Inception_Block_V1 (averaged multi-kernel 2D conv) — tap-as-reduction MXU kernel
# ----------------------------------------------------------------------------

def _tap_offsets(num_kernels):
    taps = []
    pmax = num_kernels - 1
    for i in range(num_kernels):
        k = 2 * i + 1
        for dy in range(k):
            for dx in range(k):
                taps.append((pmax - i + dy, pmax - i + dx))
    return tuple(taps)


def fuse_inception_weights(ws, bs):
    """Stack per-tap (Cin,Cout) matrices (scaled by 1/num_kernels) along a tap
    axis, lane-padded to 128, and average the biases."""
    num = len(ws)
    cout, cin = ws[0].shape[0], ws[0].shape[1]
    cp, fp = _round_up(cin, _LANE), _round_up(cout, _LANE)
    mats = []
    for i, w in enumerate(ws):                 # torch layout (Cout, Cin, k, k)
        k = 2 * i + 1
        for dy in range(k):
            for dx in range(k):
                m = jnp.transpose(w[:, :, dy, dx]) / num       # (Cin, Cout)
                mats.append(jnp.pad(m, ((0, cp - cin), (0, fp - cout))))
    W = jnp.stack(mats, axis=0).astype(jnp.bfloat16)            # (n_taps, Cp, Fp)
    b = jnp.pad((sum(bs) / num).astype(jnp.float32), (0, fp - cout)).reshape(1, fp)
    return W, b


def _inception_kernel(shift_ref, x_ref, w_ref, b_ref, o_ref, acc_ref, *,
                      m_blk, n_taps, apply_gelu):
    # x_ref: (1, Lflat, Cp) f32 (flat halo-padded frame, resident per batch)
    # w_ref: (1, Cp, Fp) bf16 (this tap)     b_ref: (1, Fp) f32
    # o_ref: (1, m_blk, Fp)                  acc_ref: (m_blk, Fp) f32 scratch
    r = pl.program_id(1)
    t = pl.program_id(2)

    @pl.when(t == 0)
    def _():
        acc_ref[...] = jnp.zeros_like(acc_ref)

    start = r * m_blk + shift_ref[t]
    lhs = x_ref[0, pl.ds(start, m_blk), :].astype(jnp.bfloat16)
    acc_ref[...] += jnp.dot(lhs, w_ref[0], preferred_element_type=jnp.float32)

    @pl.when(t == n_taps - 1)
    def _():
        acc = acc_ref[...] + b_ref[...]
        if apply_gelu:
            acc = jax.nn.gelu(acc, approximate=False)
        o_ref[0] = acc.astype(o_ref.dtype)


def inception_conv(x_nhwc, w_taps, bias, num_kernels, apply_gelu):
    """Averaged multi-kernel 'same' conv2d.  x: (B,H,W,C) -> (B,H,W,Fp) f32.

    One halo-padded frame shared by every kernel size; each tap is one
    (rows, Cp) @ (Cp, Fp) MXU matmul on a flat-shifted view of the resident
    activation, accumulated over an 'arbitrary' tap grid axis."""
    B, H, W, C = x_nhwc.shape
    n_taps, Cp, Fp = w_taps.shape
    p = num_kernels - 1
    Wt = W + 2 * p

    x = x_nhwc.astype(jnp.float32)
    if Cp != C:
        x = jnp.pad(x, ((0, 0), (0, 0), (0, 0), (0, Cp - C)))

    # Row-blocking over output rows (second 'parallel' grid axis for megacore).
    if H * Wt <= 2048:
        RH, R = H, 1
    else:
        step = 8 // math.gcd(Wt, 8)
        RH = max(step, (max(1, 1024 // Wt) // step) * step)
        R = -(-H // RH)
    m_blk = RH * Wt
    extra_rows = R * RH - H
    pad_bottom = p + extra_rows + 1           # +1 guard row for flat-shift overrun

    x = jnp.pad(x, ((0, 0), (p, pad_bottom), (p, p), (0, 0)))
    Lflat = (R * RH + 2 * p + 1) * Wt
    x_flat = x.reshape(B, Lflat, Cp)

    taps = _tap_offsets(num_kernels)
    shifts = jnp.asarray([oy * Wt + ox for (oy, ox) in taps], jnp.int32)

    kern = functools.partial(_inception_kernel, m_blk=m_blk, n_taps=n_taps,
                             apply_gelu=apply_gelu)
    out = pl.pallas_call(
        kern,
        out_shape=jax.ShapeDtypeStruct((B, R * m_blk, Fp), jnp.float32),
        grid_spec=pltpu.PrefetchScalarGridSpec(
            num_scalar_prefetch=1,
            grid=(B, R, n_taps),
            in_specs=[pl.BlockSpec((1, Lflat, Cp), lambda b, r, t, s: (b, 0, 0)),
                      pl.BlockSpec((1, Cp, Fp), lambda b, r, t, s: (t, 0, 0)),
                      pl.BlockSpec((1, Fp), lambda b, r, t, s: (0, 0))],
            out_specs=pl.BlockSpec((1, m_blk, Fp), lambda b, r, t, s: (b, r, 0)),
            scratch_shapes=[pltpu.VMEM((m_blk, Fp), jnp.float32)]),
        compiler_params=pltpu.CompilerParams(
            dimension_semantics=("parallel", "parallel", "arbitrary"),
            vmem_limit_bytes=_VMEM_LIMIT),
    )(shifts, x_flat, w_taps, bias)

    # Keep the channel padding (Fp) so conv2 can consume conv1 directly.
    return out[:, :H * Wt, :].reshape(B, H, Wt, Fp)[:, :, :W, :]


# ----------------------------------------------------------------------------
# Fused softmax-weighted period aggregation + residual + LayerNorm (row-tiled)
# ----------------------------------------------------------------------------

def _agg_ln_kernel(*refs, k):
    # refs: res_0..res_{k-1}, x, w, gamma, beta, out
    x_ref = refs[k]
    w_ref = refs[k + 1]
    g_ref = refs[k + 2]
    b_ref = refs[k + 3]
    o_ref = refs[k + 4]

    acc = x_ref[0].astype(jnp.float32)
    wv = w_ref[0]                                   # (1, k)
    for i in range(k):
        acc = acc + refs[i][0].astype(jnp.float32) * wv[:, i:i + 1]
    mean = jnp.mean(acc, axis=-1, keepdims=True)
    var = jnp.mean(jnp.square(acc - mean), axis=-1, keepdims=True)
    y = (acc - mean) * jax.lax.rsqrt(var + 1e-5)
    o_ref[0] = (y * g_ref[...] + b_ref[...]).astype(o_ref.dtype)


def aggregate_ln(res_list, w_bk, x, gamma, beta):
    B, T, N = x.shape
    k = len(res_list)
    if T <= 1024:
        tt, Tp = T, T
    else:
        tt = 512
        Tp = _round_up(T, tt)

    def pad_t(a):
        a = a.astype(jnp.float32)
        return a if Tp == T else jnp.pad(a, ((0, 0), (0, Tp - T), (0, 0)))

    operands = [pad_t(r) for r in res_list]
    operands.append(pad_t(x))
    operands.append(w_bk.astype(jnp.float32).reshape(B, 1, k))
    operands.append(gamma.astype(jnp.float32).reshape(1, N))
    operands.append(beta.astype(jnp.float32).reshape(1, N))

    row_spec = pl.BlockSpec((1, tt, N), lambda b, j: (b, j, 0))
    in_specs = ([pl.BlockSpec((1, tt, N), lambda b, j: (b, j, 0))
                 for _ in range(k + 1)]
                + [pl.BlockSpec((1, 1, k), lambda b, j: (b, 0, 0)),
                   pl.BlockSpec((1, N), lambda b, j: (0, 0)),
                   pl.BlockSpec((1, N), lambda b, j: (0, 0))])

    out = pl.pallas_call(
        functools.partial(_agg_ln_kernel, k=k),
        out_shape=jax.ShapeDtypeStruct((B, Tp, N), jnp.float32),
        grid=(B, Tp // tt),
        in_specs=in_specs,
        out_specs=row_spec,
        compiler_params=pltpu.CompilerParams(
            dimension_semantics=("parallel", "parallel"),
            vmem_limit_bytes=_VMEM_LIMIT),
    )(*operands)
    return out[:, :T, :]


# ----------------------------------------------------------------------------
# Embeddings / FFT period selection / TimesBlock / Model forward
# ----------------------------------------------------------------------------

def positional_embedding(T, d_model):
    pe = np.zeros((T, d_model), np.float32)
    position = np.arange(T, dtype=np.float32)[:, None]
    div_term = np.exp(np.arange(0, d_model, 2, dtype=np.float32)
                      * -(math.log(10000.0) / d_model))
    pe[:, 0::2] = np.sin(position * div_term)
    pe[:, 1::2] = np.cos(position * div_term)[:, : d_model // 2]
    return jnp.asarray(pe)


def fft_for_period(x, k):
    # TODO(synk): the top-k indices are pulled to host (mirrors the reference
    # .detach().cpu().numpy()); period-dependent shapes re-trace the conv kernels
    # whenever the dominant periods change between forwards.
    xf = jnp.fft.rfft(x.astype(jnp.float32), axis=1)
    amp = jnp.abs(xf)                       # (B, F, N)
    freq = amp.mean(axis=0).mean(axis=-1)   # (F,)
    freq = freq.at[0].set(0.0)
    _, top = jax.lax.top_k(freq, k)
    top_np = np.asarray(jax.device_get(top))
    top_np = np.maximum(top_np, 1)
    period = np.maximum(x.shape[1] // top_np, 1)
    period_weight = amp.mean(axis=-1)[:, top]   # (B, k)
    return period, period_weight


def times_block_ln(x, blk, top_k, num_kernels, ln_g, ln_b):
    B, T, N = x.shape
    periods, period_weight = fft_for_period(x, top_k)
    res = []
    for i in range(top_k):
        period = int(periods[i])
        if T % period != 0:
            length = (T // period + 1) * period
            pad = jnp.zeros((B, length - T, N), x.dtype)
            out = jnp.concatenate([x, pad], axis=1)
        else:
            length = T
            out = x
        # (B, length//period, period, N) is NHWC with C = d_model
        out = out.reshape(B, length // period, period, N)
        h = inception_conv(out, blk['w1'], blk['b1'], num_kernels, apply_gelu=True)
        h = inception_conv(h, blk['w2'], blk['b2'], num_kernels, apply_gelu=False)
        res.append(h[..., :N].reshape(B, length, N)[:, :T, :])
    w = jax.nn.softmax(period_weight.astype(jnp.float32), axis=1)   # (B, k)
    return aggregate_ln(res, w, x, ln_g, ln_b)


def model_forward(params, x_enc, x_mark_enc, x_dec, x_mark_dec):
    cfg = params['cfg']
    B, seq_len, enc_in = x_enc.shape
    d_model = cfg['d_model']
    pred_len = cfg['pred_len']
    T2 = seq_len + pred_len

    # Non-stationary normalization
    means = jnp.mean(x_enc, axis=1, keepdims=True)
    x = x_enc - means
    stdev = jnp.sqrt(jnp.var(x, axis=1, keepdims=True) + 1e-5)
    x = x / stdev

    # Fused DataEmbedding: [circular conv patches | x_mark] @ [Wtok ; WtimeF] + pos
    xp = jnp.concatenate([x[:, -1:, :], x, x[:, :1, :]], axis=1)     # circular pad
    tok_patches = jnp.concatenate([xp[:, dk:dk + seq_len, :] for dk in range(3)],
                                  axis=-1)                           # (B, T, 3*Cin)
    a_emb = jnp.concatenate([tok_patches, x_mark_enc], axis=-1).reshape(B * seq_len, -1)
    pos_rows = jnp.tile(params['pos_pe'][:seq_len], (B, 1))          # (B*T, d_model)
    enc_out = matmul_bias(a_emb, params['emb_w'], d_model, residual=pos_rows,
                          out_dtype=jnp.bfloat16)                    # loss-free bf16
    enc_out = enc_out.reshape(B, seq_len, d_model)

    # predict_linear along the time axis
    a = jnp.transpose(enc_out, (0, 2, 1)).reshape(B * d_model, seq_len)
    o = matmul_bias(a, params['pred_w'], T2, b_p=params['pred_b'])
    enc_out = jnp.transpose(o.reshape(B, d_model, T2), (0, 2, 1))

    # TimesBlocks with fused aggregation + residual + shared LayerNorm
    for blk in params['blocks']:
        enc_out = times_block_ln(enc_out, blk, cfg['top_k'], cfg['num_kernels'],
                                 params['ln_g'], params['ln_b'])

    # Projection + de-normalization
    dec = matmul_bias(enc_out.reshape(B * T2, d_model), params['proj_w'],
                      cfg['c_out'], b_p=params['proj_b'])
    dec = dec.reshape(B, T2, cfg['c_out'])
    dec = dec * stdev[:, 0:1, :] + means[:, 0:1, :]
    return dec[:, -pred_len:, :]


# ----------------------------------------------------------------------------
# Deterministic parameter init (weights pre-transposed / padded / bf16-cast)
# ----------------------------------------------------------------------------

def _make_inception_raw(key, cin, cout, num_kernels):
    ws, bs = [], []
    for i in range(num_kernels):
        k = 2 * i + 1
        key, k1, k2 = jax.random.split(key, 3)
        ws.append(0.02 * jax.random.normal(k1, (cout, cin, k, k), jnp.float32))
        bs.append(0.02 * jax.random.normal(k2, (cout,), jnp.float32))
    return ws, bs


def init_params(key, cfg):
    d_model, d_ff = cfg['d_model'], cfg['d_ff']
    enc_in, c_out = cfg['enc_in'], cfg['c_out']
    seq_len, pred_len = cfg['seq_len'], cfg['pred_len']
    keys = jax.random.split(key, 8)

    def nrm(k, shape):
        return 0.02 * jax.random.normal(k, shape, jnp.float32)

    token_w = nrm(keys[0], (d_model, enc_in, 3))       # Conv1d weight (torch layout)
    timef_w = nrm(keys[1], (d_model, 4))               # freq='h' -> 4 time features
    pred_w = nrm(keys[2], (seq_len + pred_len, seq_len))
    pred_b = nrm(keys[3], (seq_len + pred_len,))
    proj_w = nrm(keys[4], (c_out, d_model))
    proj_b = nrm(keys[5], (c_out,))

    params = {'cfg': cfg}
    # Fused embedding weight: rows = [3*enc_in token-conv taps ; 4 timeF feats]
    tok_kn = jnp.transpose(token_w, (2, 1, 0)).reshape(3 * enc_in, d_model)
    emb_kn = jnp.concatenate([tok_kn, timef_w.T], axis=0)
    params['emb_w'] = prep_matmul_weight(emb_kn)
    params['pred_w'] = prep_matmul_weight(pred_w.T)
    params['pred_b'] = prep_bias(pred_b)
    params['proj_w'] = prep_matmul_weight(proj_w.T)
    params['proj_b'] = prep_bias(proj_b)
    params['ln_g'] = jnp.ones((d_model,), jnp.float32)
    params['ln_b'] = jnp.zeros((d_model,), jnp.float32)
    params['pos_pe'] = positional_embedding(seq_len, d_model)

    blocks = []
    kblk = keys[6]
    for _ in range(cfg['e_layers']):
        kblk, k1, k2 = jax.random.split(kblk, 3)
        w1_raw, b1_raw = _make_inception_raw(k1, d_model, d_ff, cfg['num_kernels'])
        w2_raw, b2_raw = _make_inception_raw(k2, d_ff, d_model, cfg['num_kernels'])
        w1, b1 = fuse_inception_weights(w1_raw, b1_raw)
        w2, b2 = fuse_inception_weights(w2_raw, b2_raw)
        blocks.append({'w1': w1, 'b1': b1, 'w2': w2, 'b2': b2})
    params['blocks'] = blocks
    return params


# ----------------------------------------------------------------------------

if __name__ == "__main__":
    cfg = dict(task_name='long_term_forecast', seq_len=16, label_len=8, pred_len=8,
               enc_in=4, c_out=4, d_model=16, d_ff=16, e_layers=2, top_k=2,
               num_kernels=3, embed='timeF', freq='h', dropout=0.1)

    params = init_params(jax.random.PRNGKey(0), cfg)

    kx, km = jax.random.split(jax.random.PRNGKey(0))
    B = 2
    x_enc = jax.random.normal(kx, (B, cfg['seq_len'], cfg['enc_in']), jnp.float32)
    x_mark_enc = jax.random.normal(km, (B, cfg['seq_len'], 4), jnp.float32)
    x_dec = jnp.zeros((B, cfg['label_len'] + cfg['pred_len'], cfg['enc_in']), jnp.float32)
    x_mark_dec = jnp.zeros((B, cfg['label_len'] + cfg['pred_len'], 4), jnp.float32)

    out = model_forward(params, x_enc, x_mark_enc, x_dec, x_mark_dec)
    out = jax.block_until_ready(out)
    assert out.shape == (B, cfg['pred_len'], cfg['c_out'])
    assert bool(jnp.all(jnp.isfinite(out)))
    print("KERNEL_OK")
</pallas_src>

<mosaic_0001>
module attributes {stable_mosaic.version = 11 : i64} {
  func.func @_mm_kernel(%arg0: i32, %arg1: i32, %arg2: i32, %arg3: memref<32x128xbf16, #tpu.memory_space<vmem>>, %arg4: memref<128x128xbf16, #tpu.memory_space<vmem>>, %arg5: memref<32x128xf32, #tpu.memory_space<vmem>>, %arg6: memref<32x128xbf16, #tpu.memory_space<vmem>>, %arg7: memref<32x128xf32, #tpu.memory_space<vmem>>) attributes {dimension_semantics = [#tpu.dimension_semantics<parallel>, #tpu.dimension_semantics<parallel>, #tpu.dimension_semantics<arbitrary>], iteration_bounds = array<i64: 1, 1, 1>, scalar_prefetch = 0 : i64, scratch_operands = 1 : i64, tpu.core_type = #tpu.core_type<tc>, window_params = [{transform_indices = @transform_0, window_bounds = array<i64: 32, 128>}, {transform_indices = @transform_1, window_bounds = array<i64: 128, 128>}, {transform_indices = @transform_2, window_bounds = array<i64: 32, 128>}, {transform_indices = @transform_3, window_bounds = array<i64: 32, 128>}]} {
    %c0_i32 = arith.constant 0 : i32
    %0 = arith.cmpi eq, %arg2, %c0_i32 : i32
    %1 = arith.extui %0 : i1 to i32
    %c0_i32_0 = arith.constant 0 : i32
    %2 = arith.cmpi ne, %1, %c0_i32_0 : i32
    scf.if %2 {
      %cst_10 = arith.constant 0.000000e+00 : f32
      %12 = vector.broadcast %cst_10 : f32 to vector<32x128xf32>
      %c0_11 = arith.constant 0 : index
      %c0_12 = arith.constant 0 : index
      %13 = vector.load %arg7[%c0_11, %c0_12] : memref<32x128xf32, #tpu.memory_space<vmem>>, vector<32x128xf32>
      tpu.vector_store %arg7[%c0_11, %c0_12], %12 {strides = array<i32>} : memref<32x128xf32, #tpu.memory_space<vmem>>, vector<32x128xf32>,
    } else {
    }
    %c0 = arith.constant 0 : index
    %c0_1 = arith.constant 0 : index
    %3 = vector.load %arg7[%c0, %c0_1] : memref<32x128xf32, #tpu.memory_space<vmem>>, vector<32x128xf32>
    %c0_2 = arith.constant 0 : index
    %c0_3 = arith.constant 0 : index
    %4 = vector.load %arg3[%c0_2, %c0_3] : memref<32x128xbf16, #tpu.memory_space<vmem>>, vector<32x128xbf16>
    %c0_4 = arith.constant 0 : index
    %c0_5 = arith.constant 0 : index
    %5 = vector.load %arg4[%c0_4, %c0_5] : memref<128x128xbf16, #tpu.memory_space<vmem>>, vector<128x128xbf16>
    %cst = arith.constant dense<0.000000e+00> : vector<32x128xf32>
    %6 = tpu.matmul %4, %5, %cst {dimension_numbers = #tpu.dot_dimension_numbers<[1], [0], [0], [1], [0, 0, 1, 1], [], []>} : vector<32x128xbf16>, vector<128x128xbf16>, vector<32x128xf32> -> vector<32x128xf32>
    %7 = arith.addf %3, %6 : vector<32x128xf32>
    %c0_6 = arith.constant 0 : index
    %c0_7 = arith.constant 0 : index
    %8 = vector.load %arg7[%c0_6, %c0_7] : memref<32x128xf32, #tpu.memory_space<vmem>>, vector<32x128xf32>
    tpu.vector_store %arg7[%c0_6, %c0_7], %7 {strides = array<i32>} : memref<32x128xf32, #tpu.memory_space<vmem>>, vector<32x128xf32>,
    %c0_i32_8 = arith.constant 0 : i32
    %9 = arith.cmpi eq, %arg2, %c0_i32_8 : i32
    %10 = arith.extui %9 : i1 to i32
    %c0_i32_9 = arith.constant 0 : i32
    %11 = arith.cmpi ne, %10, %c0_i32_9 : i32
    scf.if %11 {
      %c0_10 = arith.constant 0 : index
      %c0_11 = arith.constant 0 : index
      %12 = vector.load %arg7[%c0_10, %c0_11] : memref<32x128xf32, #tpu.memory_space<vmem>>, vector<32x128xf32>
      %c0_12 = arith.constant 0 : index
      %c0_13 = arith.constant 0 : index
      %13 = vector.load %arg5[%c0_12, %c0_13] : memref<32x128xf32, #tpu.memory_space<vmem>>, vector<32x128xf32>
      %14 = arith.addf %12, %13 : vector<32x128xf32>
      %15 = arith.truncf %14 : vector<32x128xf32> to vector<32x128xbf16>
      %c0_14 = arith.constant 0 : index
      %c0_15 = arith.constant 0 : index
      %16 = vector.load %arg6[%c0_14, %c0_15] : memref<32x128xbf16, #tpu.memory_space<vmem>>, vector<32x128xbf16>
      tpu.vector_store %arg6[%c0_14, %c0_15], %15 {strides = array<i32>} : memref<32x128xbf16, #tpu.memory_space<vmem>>, vector<32x128xbf16>,
    } else {
    }
    return
  }
  func.func @transform_0(%arg0: i32, %arg1: i32, %arg2: i32) -> (i32, i32) {
    %c0_i32 = arith.constant 0 : i32
    return %arg0, %arg2 : i32, i32
  }
  func.func @transform_1(%arg0: i32, %arg1: i32, %arg2: i32) -> (i32, i32) {
    %c0_i32 = arith.constant 0 : i32
    return %arg2, %arg1 : i32, i32
  }
  func.func @transform_2(%arg0: i32, %arg1: i32, %arg2: i32) -> (i32, i32) {
    %c0_i32 = arith.constant 0 : i32
    return %arg0, %arg1 : i32, i32
  }
  func.func @transform_3(%arg0: i32, %arg1: i32, %arg2: i32) -> (i32, i32) {
    %c0_i32 = arith.constant 0 : i32
    return %arg0, %arg1 : i32, i32
  }
}

</mosaic_0001>

<bundles_post_ra>
// kernel: tpu_custom_call.1
= control target key start
LH: loop header
LB: loop body
LE: loop exit
PB: predicated region body
PF: predicated region fallthrough
CT: control target
= control target key end

     0   :  { %8 = vsyncpa [#allocation4], 0  ;;  %s471_s0 = inlined_call_operand.hbm [shape: bf16[32,128], index: 0, kind: input, shape index: {}]   ;;  %s472_s1 = inlined_call_operand.hbm [shape: bf16[128,128], index: 1, kind: input, shape index: {}]   ;;  %s473_s2 = inlined_call_operand.hbm [shape: f32[32,128], index: 2, kind: input, shape index: {}]   ;;  %s474_s3 = inlined_call_operand.hbm [shape: bf16[32,128], index: 3, kind: output, shape index: {}]  }
   0x1   :  { %9 = vsyncpa [#allocation7], 0 }
   0x2   :  { %10 = vsyncpa [#allocation5], 0  ;;  %s422_s12 = smov [#allocation6]   ;;  %s423_s14 = smov [#allocation3]  }
   0x3   :  { %s28_s13 = sshll.u32 %s422_s12, 4  ;;  %s16_s15 = sshll.u32 %s423_s14, 4  ;;  %s29_s13 = int_to_ptr.vmem [resolvable:$true] %s28_s13  ;;  %s17_s15 = int_to_ptr.vmem [resolvable:$true] %s16_s15 }
   0x4   :  { %s344_s16 = scalar_lea.vmem %s29_s13, 1024  ;;  %p349_p1 = scmp.lt.s32.totalorder %s29_s13, %s29_s13 }
   0x5   :  { %p345_p0 = scmp.ne.s32.totalorder %s29_s13, %s344_s16  ;;  %p350_p2 = scmp.lt.s32.totalorder %s344_s16, %s344_s16 }
   0x7   :  { %p351_p3 = por %p350_p2, %p349_p1 }
   0x9   :  { %p352_p4 = pnand %p351_p3, %p345_p0 }
   0xb   :  { %355 = shalt.err (!%p352_p4)
}
   0xc   :  { %s424_s17 = smov 64   ;;  %s425_s18 = smov 4  }
   0xd   :  { %34 = dma.hbm_to_vmem [thread:$0]  %s472_s1, 1024, %s29_s13, [#allocation7], %s424_s17, %s424_s17, %s425_s18  }
   0xe   :  { %s364_s21 = scalar_lea.vmem %s17_s15, 256  ;;  %p369_p6 = scmp.lt.s32.totalorder %s17_s15, %s17_s15 }
   0xf   :  { %p365_p5 = scmp.ne.s32.totalorder %s17_s15, %s364_s21  ;;  %p370_p7 = scmp.lt.s32.totalorder %s364_s21, %s364_s21 }
  0x11   :  { %p371_p8 = por %p370_p7, %p369_p6 }
  0x13   :  { %p372_p9 = pnand %p371_p8, %p365_p5 }
  0x15   :  { %375 = shalt.err (!%p372_p9)
}
  0x16   :  { %22 = dma.hbm_to_vmem [thread:$0]  %s471_s0, 256, %s17_s15, [#allocation4], %s424_s17, %s424_s17, %s425_s18  }
  0x17   :  { %s426_s24 = smov [#allocation8]  }
  0x18   :  { %s40_s25 = sshll.u32 %s426_s24, 4  ;;  %s41_s25 = int_to_ptr.vmem [resolvable:$true] %s40_s25 }
  0x19   :  { %s384_s26 = scalar_lea.vmem %s41_s25, 512  ;;  %p389_p11 = scmp.lt.s32.totalorder %s41_s25, %s41_s25 }
  0x1a   :  { %p385_p10 = scmp.ne.s32.totalorder %s41_s25, %s384_s26  ;;  %p390_p12 = scmp.lt.s32.totalorder %s384_s26, %s384_s26 }
  0x1c   :  { %p391_p13 = por %p390_p12, %p389_p11 }
  0x1e   :  { %p392_p0 = pnand %p391_p13, %p385_p10 }
  0x20   :  { %395 = shalt.err (!%p392_p0)
}
  0x21   :  { %s427_s1 = smov 128   ;;  %s428_s27 = smov 8  }
  0x22   :  { %46 = dma.hbm_to_vmem [thread:$0]  %s473_s2, 512, %s41_s25, [#allocation7], %s427_s1, %s427_s1, %s428_s27  }
  0x23   :  { %416 = dma.done.wait [#allocation4], 256  }
  0x24   :  { %417 = vsyncadd [#allocation4], 4294967040 }
  0x25   :  { %418 = dma.done.wait [#allocation7], 1536  }
  0x26   :  { %419 = vsyncadd [#allocation7], 4294965760  ;;  %v326_v0 = vld [vmem:[#allocation6 + $0x38] sm:$0xff]   ;;  %v327_v1 = vld [vmem:[#allocation6 + $0x30] sm:$0xff]   ;;  %s429_s0 = smov [#allocation9]  }
  0x27   :  { %298 = vmatprep.subr.bf16.mxu0 %v326_v0  ;;  %v328_v2 = vld [vmem:[#allocation6 + $0x28] sm:$0xff]   ;;  %v329_v3 = vld [vmem:[#allocation6 + $0x20] sm:$0xff]   ;;  %v334_v4 = vld [vmem:[#allocation3] sm:$0xff]   ;;  %s246_s2 = sshll.u32 %s429_s0, 4  ;;  %s247_s2 = int_to_ptr.vmem [resolvable:$true] %s246_s2 }
  0x28   :  { %299 = vmatpush3.bf16.msra.mxu0 %v326_v0  ;;  %314 = vmatprep.mubr.bf16.mxu0 %v334_v4  ;;  %v330_v5 = vld [vmem:[#allocation6 + $0x18] sm:$0xff]   ;;  %v331_v6 = vld [vmem:[#allocation6 + $0x10] sm:$0xff]   ;;  %v332_v7 = vld [vmem:[#allocation6 + $0x8] sm:$0xff]   ;;  %s396_s30 = scalar_lea.vmem %s247_s2, 256  ;;  %p401_p2 = scmp.lt.s32.totalorder %s247_s2, %s247_s2 }
  0x29   :  { %300 = vmatprep.subr.bf16.mxu0 %v327_v1  ;;  %v333_v8 = vld [vmem:[#allocation6] sm:$0xff]   ;;  %v335_v9 = vld [vmem:[#allocation3 + $0x8] sm:$0xff]   ;;  %v215_v11 = vld [vmem:[#allocation8 + $0x10] sm:$0xff]  ;;  %p397_p1 = scmp.ne.s32.totalorder %s247_s2, %s396_s30  ;;  %p402_p3 = scmp.lt.s32.totalorder %s396_s30, %s396_s30 }
  0x2a   :  { %v216_v13 = vld [vmem:[#allocation8 + $0x18] sm:$0xff]  ;;  %v213_v14 = vld [vmem:[#allocation8] sm:$0xff]  ;;  %v214_v16 = vld [vmem:[#allocation8 + $0x8] sm:$0xff] }
  0x2b   :  { %p403_p4 = por %p402_p3, %p401_p2 }
  0x2c   :  { %301 = vmatpush3.bf16.msra.mxu0 %v327_v1 }
  0x2d   :  { %302 = vmatprep.subr.bf16.mxu0 %v328_v2  ;;  %p404_p5 = pnand %p403_p4, %p397_p1 }
  0x30   :  { %303 = vmatpush3.bf16.msra.mxu0 %v328_v2 }
  0x31   :  { %304 = vmatprep.subr.bf16.mxu0 %v329_v3 }
  0x34   :  { %305 = vmatpush3.bf16.msra.mxu0 %v329_v3 }
  0x35   :  { %306 = vmatprep.subr.bf16.mxu0 %v330_v5 }
  0x38   :  { %307 = vmatpush3.bf16.msra.mxu0 %v330_v5 }
  0x39   :  { %308 = vmatprep.subr.bf16.mxu0 %v331_v6 }
  0x3c   :  { %309 = vmatpush3.bf16.msra.mxu0 %v331_v6 }
  0x3d   :  { %310 = vmatprep.subr.bf16.mxu0 %v332_v7 }
  0x40   :  { %311 = vmatpush3.bf16.msra.mxu0 %v332_v7 }
  0x41   :  { %312 = vmatprep.subr.bf16.mxu0 %v333_v8 }
  0x44   :  { %313 = vmatpush3.bf16.msra.mxu0 %v333_v8 }
  0x47   :  { %315 = vmatmul.mubr.bf16.vlgmr.msra.gmra.mxu0 %v335_v9 }
 0x107   :  { %v316_v10 = vpop.f32.mrf.mxu0 }
 0x108   :  { %v219_v17 = vadd.f32 %v316_v10, %v215_v11 }
 0x109   :  { %v183_v12 = vpop.f32.mrf.mxu0 }
 0x10a   :  { %v217_v20 = vadd.f32 %v213_v14, %v183_v12 }
 0x10b   :  { %v317_v15 = vpop.f32.mrf.mxu0 }
 0x10c   :  { %v220_v18 = vadd.f32 %v317_v15, %v216_v13 }
 0x10d   :  { %v186_v19 = vpop.f32.mrf.mxu0 }
 0x10e   :  { %v285_v21 = vpack.c.bf16 %v220_v18, %v219_v17  ;;  %v218_v22 = vadd.f32 %v214_v16, %v186_v19 }
 0x110   :  { %287 = vst [vmem:[#allocation9 + $0x8] sm:$0xff] %v285_v21   ;;  %v280_v23 = vpack.c.bf16 %v218_v22, %v217_v20 }
 0x112   :  { %281 = vst [vmem:[#allocation9] sm:$0xff] %v280_v23  }
 0x113   :  { %407 = shalt.err (!%p404_p5)
}
 0x114   :  { %252 = dma.vmem_to_hbm [thread:$0]  %s247_s2, 256, %s474_s3, [#allocation5], %s424_s17, %s424_s17, %s425_s18  }
 0x115   :  { %420 = dma.done.wait [#allocation5], 256  }
 0x116   :  { %421 = vsyncadd [#allocation5], 4294967040 }
 0x117   :  { %256 = vsyncpa [#allocation4], 1 }
 0x118   :  { %257 = vsyncpa [#allocation7], 1 }
 0x119   :  { %258 = vsyncpa [#allocation5], 1 }

</bundles_post_ra>
